<compile_context>
chip_gen: v7x
topology: tpu7x:2x2x1
jax: 0.10.0
libtpu: 0.0.40
codegen_flags: <defaults>
</compile_context>

<pallas_src>
import numpy as np
import jax
import jax.numpy as jnp
from jax import lax
from jax.experimental import pallas as pl
from jax.experimental.pallas import tpu as pltpu

# ---------------- model hyper-params (small, consistent with the module) ----
FIELD_DIMS = (10, 20, 30)            # field_dims
NUM_FIELDS = len(FIELD_DIMS)
EMBED_DIM = 16                       # embed_dim
MLP_DIMS = (32, 16)                  # mlp_dims
H1, H2 = MLP_DIMS
EMBED_OUT = NUM_FIELDS * EMBED_DIM   # embed_output_dim
BN_EPS = 1e-5

TOTAL = int(sum(FIELD_DIMS))         # 60 rows in the embedding tables
TOTAL_PAD = 128                      # gather axis padded to one full lane tile
EXT_ROWS = EMBED_DIM + 1             # embedding rows + 1 FeaturesLinear row
EXT_ROWS_PAD = 24                    # sublane-padded (multiple of 8)

BATCH = 256                          # demo batch (small)
TILE_B = 2048                        # production batch tile (multiple of 128);
                                     # clamped to the padded batch in the wrapper.


# ---------------------------- Pallas kernel ---------------------------------
def deepfm_kernel(idx_ref, tab_ref, w1_ref, w2_ref, p_ref, out_ref):
    """One batch tile, batch on the lane axis.

    idx_ref : (F, TB)  int32 global (offset-applied) indices, lane = batch
    tab_ref : (24, 128) f32 combined table: rows [0:16]=emb^T, row 16=fc^T,
              rows 17..23 and cols 60..127 are zero padding (VMEM-resident)
    w1_ref  : (F, H1, E) Linear1 weight (eval-BN folded), split per field
    w2_ref  : (H2, H1)   Linear2 weight (eval-BN folded)
    p_ref   : (H1, 4)    packed params: [:,0]=b1', [:H2,1]=b2', [:H2,2]=w3 row,
              [0,3]=linear_bias + b3
    out_ref : (1, TB)    sigmoid(logits), lane-dense
    """
    TB = idx_ref.shape[1]
    tab = tab_ref[...]                                   # (24, 128) f32
    p = p_ref[...]                                       # (H1, 4)  f32
    b1 = p[:, 0:1]                                       # (H1, 1)
    b2 = p[:H2, 1:2]                                     # (H2, 1)
    w3c = p[:H2, 2:3]                                    # (H2, 1)
    c0 = p[0:1, 3:4]                                     # (1, 1)  lin bias + b3

    # One-hot gather scaffold: sublane axis = table row id, lane axis = batch.
    iota = lax.broadcasted_iota(jnp.int32, (TOTAL_PAD, TB), 0)

    lin = None
    sum_f = None
    sum_sq = None
    hacc = None
    for f in range(NUM_FIELDS):                          # static loop (3 fields)
        onehot = (iota == idx_ref[f:f + 1, :]).astype(jnp.float32)  # (128, TB)
        # Gather via MXU: (24, 128) @ (128, TB) -> (24, TB).
        blk_ext = jnp.dot(tab, onehot,
                          preferred_element_type=jnp.float32)
        blk = blk_ext[0:EMBED_DIM, :]                    # (E, TB) field embed
        lv = blk_ext[EMBED_DIM:EMBED_DIM + 1, :]         # (1, TB) fc value
        hf = jnp.dot(w1_ref[f], blk,                     # (H1, TB) partial MLP
                     preferred_element_type=jnp.float32)
        if f == 0:
            lin, sum_f, sum_sq, hacc = lv, blk, blk * blk, hf
        else:
            lin = lin + lv
            sum_f = sum_f + blk
            sum_sq = sum_sq + blk * blk
            hacc = hacc + hf

    # ---- FactorizationMachine (reduce_sum=True)
    fm = 0.5 * jnp.sum(sum_f * sum_f - sum_sq,
                       axis=0, keepdims=True)            # (1, TB)

    # ---- MLP (BN folded, Dropout = identity at inference)
    h = jnp.maximum(hacc + b1, 0.0)                      # (H1, TB)
    h = jnp.dot(w2_ref[...], h,
                preferred_element_type=jnp.float32) + b2 # (H2, TB)
    h = jnp.maximum(h, 0.0)
    # output Linear(->1): VPU broadcast-mult + sublane reduce (no N=1 matmul)
    mlp = jnp.sum(h * w3c, axis=0, keepdims=True)        # (1, TB)

    # ---- combine + sigmoid (exact reciprocal; exp on the EUP slot)
    z = lin + fm + mlp + c0
    out_ref[...] = pl.reciprocal(1.0 + jnp.exp(-z))


# ------------------------------- wrapper -------------------------------------
def deepfm_forward(x_idx, params, *, tile_b=TILE_B):
    """x_idx: (B, F) int32 raw per-field indices (offsets applied here)."""
    B = x_idx.shape[0]
    offsets = jnp.asarray(
        np.array((0, *np.cumsum(FIELD_DIMS)[:-1]), dtype=np.int32))
    gidx = x_idx.astype(jnp.int32) + offsets[None, :]            # (B, F) global ids
    idxT = gidx.T                                                # (F, B) lane=batch

    # Combined (embedding | fc) table, transposed and padded; stays VMEM-resident.
    tabT = jnp.zeros((EXT_ROWS_PAD, TOTAL_PAD), jnp.float32)
    tabT = tabT.at[:EMBED_DIM, :TOTAL].set(params["emb_table"].T.astype(jnp.float32))
    tabT = tabT.at[EMBED_DIM, :TOTAL].set(params["fc_table"][:, 0].astype(jnp.float32))

    # Fold eval-mode BatchNorm into the Linear weights/biases.
    s1 = params["bn1_gamma"] * jax.lax.rsqrt(params["bn1_var"] + BN_EPS)
    t1 = params["bn1_beta"] - params["bn1_mean"] * s1
    s2 = params["bn2_gamma"] * jax.lax.rsqrt(params["bn2_var"] + BN_EPS)
    t2 = params["bn2_beta"] - params["bn2_mean"] * s2
    w1f = (params["w1"] * s1[:, None]).astype(jnp.float32)        # (H1, F*E)
    b1f = params["b1"] * s1 + t1                                  # (H1,)
    w2f = (params["w2"] * s2[:, None]).astype(jnp.float32)        # (H2, H1)
    b2f = params["b2"] * s2 + t2                                  # (H2,)
    # Split w1 per field: (F, H1, E) so the kernel indexes the leading axis.
    w1p = w1f.reshape(H1, NUM_FIELDS, EMBED_DIM).transpose(1, 0, 2)

    # Pack the remaining small vectors/scalars into one (H1, 4) slab.
    slab = jnp.zeros((H1, 4), jnp.float32)
    slab = slab.at[:, 0].set(b1f)
    slab = slab.at[:H2, 1].set(b2f)
    slab = slab.at[:H2, 2].set(params["w3"][0])                   # w3 row -> column
    slab = slab.at[0, 3].set(params["lin_bias"][0] + params["b3"][0])

    # Adaptive batch tile: big for throughput, clamped for small demo batches.
    tile_b = max(128, min(int(tile_b), ((B + 127) // 128) * 128))
    tile_b = (tile_b // 128) * 128
    bp = ((B + tile_b - 1) // tile_b) * tile_b
    if bp != B:
        idxT = jnp.pad(idxT, ((0, 0), (0, bp - B)))

    out = pl.pallas_call(
        deepfm_kernel,
        out_shape=jax.ShapeDtypeStruct((1, bp), jnp.float32),
        grid=(bp // tile_b,),
        in_specs=[
            pl.BlockSpec((NUM_FIELDS, tile_b), lambda i: (0, i)),          # indices
            pl.BlockSpec((EXT_ROWS_PAD, TOTAL_PAD), lambda i: (0, 0)),     # table (resident)
            pl.BlockSpec((NUM_FIELDS, H1, EMBED_DIM), lambda i: (0, 0, 0)),# w1 (resident)
            pl.BlockSpec((H2, H1), lambda i: (0, 0)),                      # w2 (resident)
            pl.BlockSpec((H1, 4), lambda i: (0, 0)),                       # param slab
        ],
        out_specs=pl.BlockSpec((1, tile_b), lambda i: (0, i)),             # lane-dense
        compiler_params=pltpu.CompilerParams(
            dimension_semantics=("parallel",)),
    )(idxT, tabT, w1p, w2f, slab)

    return out[0, :B].reshape(B, 1)


# -------------------------- pure-JAX reference -------------------------------
def deepfm_reference(x_idx, params):
    offsets = jnp.asarray(
        np.array((0, *np.cumsum(FIELD_DIMS)[:-1]), dtype=np.int32))
    gidx = x_idx.astype(jnp.int32) + offsets[None, :]
    emb = jnp.take(params["emb_table"], gidx, axis=0)             # (B, F, E)
    lin = jnp.sum(jnp.take(params["fc_table"], gidx, axis=0)[..., 0],
                  axis=1, keepdims=True) + params["lin_bias"]
    sq_of_sum = jnp.sum(emb, axis=1) ** 2
    sum_of_sq = jnp.sum(emb ** 2, axis=1)
    fm = 0.5 * jnp.sum(sq_of_sum - sum_of_sq, axis=1, keepdims=True)
    x = emb.reshape(emb.shape[0], -1)
    h = x @ params["w1"].T + params["b1"]
    h = (h - params["bn1_mean"]) * jax.lax.rsqrt(params["bn1_var"] + BN_EPS) \
        * params["bn1_gamma"] + params["bn1_beta"]
    h = jax.nn.relu(h)
    h = h @ params["w2"].T + params["b2"]
    h = (h - params["bn2_mean"]) * jax.lax.rsqrt(params["bn2_var"] + BN_EPS) \
        * params["bn2_gamma"] + params["bn2_beta"]
    h = jax.nn.relu(h)
    mlp = h @ params["w3"].T + params["b3"]
    return jax.nn.sigmoid(lin + fm + mlp)


# ----------------------- deterministic parameter init -----------------------
def init_params(key):
    total = int(sum(FIELD_DIMS))
    ks = jax.random.split(key, 8)

    def kaiming(k, fan_in, shape):
        # torch layout: (out_features, in_features)
        return jax.random.normal(k, shape, jnp.float32) * jnp.sqrt(2.0 / fan_in)

    params = {
        # Embeddings: _init_weight_ -> normal(std=0.1)
        "emb_table": 0.1 * jax.random.normal(ks[0], (total, EMBED_DIM), jnp.float32),
        "fc_table":  0.1 * jax.random.normal(ks[1], (total, 1), jnp.float32),
        "lin_bias":  jnp.zeros((1,), jnp.float32),
        # MLP linears stored in torch (out, in) layout; kaiming_normal init
        "w1": kaiming(ks[2], EMBED_OUT, (H1, EMBED_OUT)),
        "b1": 0.01 * jax.random.normal(ks[3], (H1,), jnp.float32),
        "w2": kaiming(ks[4], H1, (H2, H1)),
        "b2": 0.01 * jax.random.normal(ks[5], (H2,), jnp.float32),
        "w3": kaiming(ks[6], H2, (1, H2)),
        "b3": 0.01 * jax.random.normal(ks[7], (1,), jnp.float32),
        # BatchNorm1d (eval): gamma=1, beta=0, running mean=0, var=1
        "bn1_gamma": jnp.ones((H1,), jnp.float32),
        "bn1_beta":  jnp.zeros((H1,), jnp.float32),
        "bn1_mean":  jnp.zeros((H1,), jnp.float32),
        "bn1_var":   jnp.ones((H1,), jnp.float32),
        "bn2_gamma": jnp.ones((H2,), jnp.float32),
        "bn2_beta":  jnp.zeros((H2,), jnp.float32),
        "bn2_mean":  jnp.zeros((H2,), jnp.float32),
        "bn2_var":   jnp.ones((H2,), jnp.float32),
    }
    return params


if __name__ == "__main__":
    key = jax.random.PRNGKey(0)
    pkey, xkey = jax.random.split(key)
    params = init_params(pkey)

    # Per-field indices, each within its own field cardinality.
    cols = []
    for f, d in enumerate(FIELD_DIMS):
        cols.append(jax.random.randint(jax.random.fold_in(xkey, f),
                                       (BATCH,), 0, d, dtype=jnp.int32))
    x_idx = jnp.stack(cols, axis=1)                               # (B, F) int32

    out = deepfm_forward(x_idx, params)
    jax.block_until_ready(out)

    assert out.shape == (BATCH, 1) and out.dtype == jnp.float32
    assert bool(jnp.all(jnp.isfinite(out)))
    assert bool(jnp.all((out >= 0.0) & (out <= 1.0)))

    ref = deepfm_reference(x_idx, params)
    max_err = float(jnp.max(jnp.abs(out - ref)))
    assert max_err < 2e-3, f"max abs error vs reference: {max_err}"

    print("KERNEL_OK")
</pallas_src>

<mosaic_0001>
module attributes {stable_mosaic.version = 11 : i64} {
  func.func @deepfm_kernel(%arg0: i32, %arg1: memref<3x256xi32, #tpu.memory_space<vmem>>, %arg2: memref<24x128xf32, #tpu.memory_space<vmem>>, %arg3: memref<3x32x16xf32, #tpu.memory_space<vmem>>, %arg4: memref<16x32xf32, #tpu.memory_space<vmem>>, %arg5: memref<32x4xf32, #tpu.memory_space<vmem>>, %arg6: memref<1x256xf32, #tpu.memory_space<vmem>>) attributes {dimension_semantics = [#tpu.dimension_semantics<parallel>], iteration_bounds = array<i64: 1>, scalar_prefetch = 0 : i64, scratch_operands = 0 : i64, tpu.core_type = #tpu.core_type<tc>, window_params = [{transform_indices = @transform_0, window_bounds = array<i64: 3, 256>}, {pipeline_mode = #tpu.pipeline_mode<synchronous>, transform_indices = @transform_1, window_bounds = array<i64: 24, 128>}, {pipeline_mode = #tpu.pipeline_mode<synchronous>, transform_indices = @transform_2, window_bounds = array<i64: 3, 32, 16>}, {pipeline_mode = #tpu.pipeline_mode<synchronous>, transform_indices = @transform_3, window_bounds = array<i64: 16, 32>}, {pipeline_mode = #tpu.pipeline_mode<synchronous>, transform_indices = @transform_4, window_bounds = array<i64: 32, 4>}, {transform_indices = @transform_5, window_bounds = array<i64: 1, 256>}]} {
    %c0 = arith.constant 0 : index
    %c0_0 = arith.constant 0 : index
    %0 = vector.load %arg2[%c0, %c0_0] : memref<24x128xf32, #tpu.memory_space<vmem>>, vector<24x128xf32>
    %c0_1 = arith.constant 0 : index
    %c0_2 = arith.constant 0 : index
    %1 = vector.load %arg5[%c0_1, %c0_2] : memref<32x4xf32, #tpu.memory_space<vmem>>, vector<32x4xf32>
    %2 = vector.extract_strided_slice %1 {offsets = [0, 0], sizes = [32, 1], strides = [1, 1]} : vector<32x4xf32> to vector<32x1xf32>
    %3 = vector.extract_strided_slice %1 {offsets = [0, 1], sizes = [16, 1], strides = [1, 1]} : vector<32x4xf32> to vector<16x1xf32>
    %4 = vector.extract_strided_slice %1 {offsets = [0, 2], sizes = [16, 1], strides = [1, 1]} : vector<32x4xf32> to vector<16x1xf32>
    %5 = vector.extract_strided_slice %1 {offsets = [0, 3], sizes = [1, 1], strides = [1, 1]} : vector<32x4xf32> to vector<1x1xf32>
    %6 = tpu.iota {dimensions = array<i32: 0>} : vector<128x256xi32>
    %c0_3 = arith.constant 0 : index
    %c0_4 = arith.constant 0 : index
    %7 = vector.load %arg1[%c0_3, %c0_4] : memref<3x256xi32, #tpu.memory_space<vmem>>, vector<1x256xi32>
    %8 = vector.broadcast %7 : vector<1x256xi32> to vector<128x256xi32>
    %9 = arith.cmpi eq, %6, %8 : vector<128x256xi32>
    %10 = arith.extui %9 : vector<128x256xi1> to vector<128x256xi32>
    %11 = arith.sitofp %10 : vector<128x256xi32> to vector<128x256xf32>
    %cst = arith.constant dense<0.000000e+00> : vector<24x256xf32>
    %12 = tpu.matmul %0, %11, %cst {dimension_numbers = #tpu.dot_dimension_numbers<[1], [0], [0], [1], [0, 0, 1, 1], [], []>} : vector<24x128xf32>, vector<128x256xf32>, vector<24x256xf32> -> vector<24x256xf32>
    %13 = vector.extract_strided_slice %12 {offsets = [0, 0], sizes = [16, 256], strides = [1, 1]} : vector<24x256xf32> to vector<16x256xf32>
    %14 = vector.extract_strided_slice %12 {offsets = [16, 0], sizes = [1, 256], strides = [1, 1]} : vector<24x256xf32> to vector<1x256xf32>
    %c0_5 = arith.constant 0 : index
    %c0_6 = arith.constant 0 : index
    %c0_7 = arith.constant 0 : index
    %15 = vector.load %arg3[%c0_5, %c0_6, %c0_7] : memref<3x32x16xf32, #tpu.memory_space<vmem>>, vector<1x32x16xf32>
    %16 = vector.shape_cast %15 : vector<1x32x16xf32> to vector<32x16xf32>
    %cst_8 = arith.constant dense<0.000000e+00> : vector<32x256xf32>
    %17 = tpu.matmul %16, %13, %cst_8 {dimension_numbers = #tpu.dot_dimension_numbers<[1], [0], [0], [1], [0, 0, 1, 1], [], []>} : vector<32x16xf32>, vector<16x256xf32>, vector<32x256xf32> -> vector<32x256xf32>
    %18 = arith.mulf %13, %13 : vector<16x256xf32>
    %c1 = arith.constant 1 : index
    %c0_9 = arith.constant 0 : index
    %19 = vector.load %arg1[%c1, %c0_9] : memref<3x256xi32, #tpu.memory_space<vmem>>, vector<1x256xi32>
    %20 = vector.broadcast %19 : vector<1x256xi32> to vector<128x256xi32>
    %21 = arith.cmpi eq, %6, %20 : vector<128x256xi32>
    %22 = arith.extui %21 : vector<128x256xi1> to vector<128x256xi32>
    %23 = arith.sitofp %22 : vector<128x256xi32> to vector<128x256xf32>
    %cst_10 = arith.constant dense<0.000000e+00> : vector<24x256xf32>
    %24 = tpu.matmul %0, %23, %cst_10 {dimension_numbers = #tpu.dot_dimension_numbers<[1], [0], [0], [1], [0, 0, 1, 1], [], []>} : vector<24x128xf32>, vector<128x256xf32>, vector<24x256xf32> -> vector<24x256xf32>
    %25 = vector.extract_strided_slice %24 {offsets = [0, 0], sizes = [16, 256], strides = [1, 1]} : vector<24x256xf32> to vector<16x256xf32>
    %26 = vector.extract_strided_slice %24 {offsets = [16, 0], sizes = [1, 256], strides = [1, 1]} : vector<24x256xf32> to vector<1x256xf32>
    %c1_11 = arith.constant 1 : index
    %c0_12 = arith.constant 0 : index
    %c0_13 = arith.constant 0 : index
    %27 = vector.load %arg3[%c1_11, %c0_12, %c0_13] : memref<3x32x16xf32, #tpu.memory_space<vmem>>, vector<1x32x16xf32>
    %28 = vector.shape_cast %27 : vector<1x32x16xf32> to vector<32x16xf32>
    %cst_14 = arith.constant dense<0.000000e+00> : vector<32x256xf32>
    %29 = tpu.matmul %28, %25, %cst_14 {dimension_numbers = #tpu.dot_dimension_numbers<[1], [0], [0], [1], [0, 0, 1, 1], [], []>} : vector<32x16xf32>, vector<16x256xf32>, vector<32x256xf32> -> vector<32x256xf32>
    %30 = arith.addf %14, %26 : vector<1x256xf32>
    %31 = arith.addf %13, %25 : vector<16x256xf32>
    %32 = arith.mulf %25, %25 : vector<16x256xf32>
    %33 = arith.addf %18, %32 : vector<16x256xf32>
    %34 = arith.addf %17, %29 : vector<32x256xf32>
    %c2 = arith.constant 2 : index
    %c0_15 = arith.constant 0 : index
    %35 = vector.load %arg1[%c2, %c0_15] : memref<3x256xi32, #tpu.memory_space<vmem>>, vector<1x256xi32>
    %36 = vector.broadcast %35 : vector<1x256xi32> to vector<128x256xi32>
    %37 = arith.cmpi eq, %6, %36 : vector<128x256xi32>
    %38 = arith.extui %37 : vector<128x256xi1> to vector<128x256xi32>
    %39 = arith.sitofp %38 : vector<128x256xi32> to vector<128x256xf32>
    %cst_16 = arith.constant dense<0.000000e+00> : vector<24x256xf32>
    %40 = tpu.matmul %0, %39, %cst_16 {dimension_numbers = #tpu.dot_dimension_numbers<[1], [0], [0], [1], [0, 0, 1, 1], [], []>} : vector<24x128xf32>, vector<128x256xf32>, vector<24x256xf32> -> vector<24x256xf32>
    %41 = vector.extract_strided_slice %40 {offsets = [0, 0], sizes = [16, 256], strides = [1, 1]} : vector<24x256xf32> to vector<16x256xf32>
    %42 = vector.extract_strided_slice %40 {offsets = [16, 0], sizes = [1, 256], strides = [1, 1]} : vector<24x256xf32> to vector<1x256xf32>
    %c2_17 = arith.constant 2 : index
    %c0_18 = arith.constant 0 : index
    %c0_19 = arith.constant 0 : index
    %43 = vector.load %arg3[%c2_17, %c0_18, %c0_19] : memref<3x32x16xf32, #tpu.memory_space<vmem>>, vector<1x32x16xf32>
    %44 = vector.shape_cast %43 : vector<1x32x16xf32> to vector<32x16xf32>
    %cst_20 = arith.constant dense<0.000000e+00> : vector<32x256xf32>
    %45 = tpu.matmul %44, %41, %cst_20 {dimension_numbers = #tpu.dot_dimension_numbers<[1], [0], [0], [1], [0, 0, 1, 1], [], []>} : vector<32x16xf32>, vector<16x256xf32>, vector<32x256xf32> -> vector<32x256xf32>
    %46 = arith.addf %30, %42 : vector<1x256xf32>
    %47 = arith.addf %31, %41 : vector<16x256xf32>
    %48 = arith.mulf %41, %41 : vector<16x256xf32>
    %49 = arith.addf %33, %48 : vector<16x256xf32>
    %50 = arith.addf %34, %45 : vector<32x256xf32>
    %51 = arith.mulf %47, %47 : vector<16x256xf32>
    %52 = arith.subf %51, %49 : vector<16x256xf32>
    %cst_21 = arith.constant dense<0.000000e+00> : vector<256xf32>
    %53 = vector.multi_reduction <add>, %52, %cst_21 [0] : vector<16x256xf32> to vector<256xf32>
    %54 = vector.shape_cast %53 : vector<256xf32> to vector<1x256xf32>
    %cst_22 = arith.constant 5.000000e-01 : f32
    %55 = vector.broadcast %cst_22 : f32 to vector<1x256xf32>
    %56 = arith.mulf %55, %54 : vector<1x256xf32>
    %57 = vector.broadcast %2 : vector<32x1xf32> to vector<32x256xf32>
    %58 = arith.addf %50, %57 : vector<32x256xf32>
    %cst_23 = arith.constant 0.000000e+00 : f32
    %59 = vector.broadcast %cst_23 : f32 to vector<32x256xf32>
    %60 = arith.maximumf %58, %59 : vector<32x256xf32>
    %c0_24 = arith.constant 0 : index
    %c0_25 = arith.constant 0 : index
    %61 = vector.load %arg4[%c0_24, %c0_25] : memref<16x32xf32, #tpu.memory_space<vmem>>, vector<16x32xf32>
    %cst_26 = arith.constant dense<0.000000e+00> : vector<16x256xf32>
    %62 = tpu.matmul %61, %60, %cst_26 {dimension_numbers = #tpu.dot_dimension_numbers<[1], [0], [0], [1], [0, 0, 1, 1], [], []>} : vector<16x32xf32>, vector<32x256xf32>, vector<16x256xf32> -> vector<16x256xf32>
    %63 = vector.broadcast %3 : vector<16x1xf32> to vector<16x256xf32>
    %64 = arith.addf %62, %63 : vector<16x256xf32>
    %cst_27 = arith.constant 0.000000e+00 : f32
    %65 = vector.broadcast %cst_27 : f32 to vector<16x256xf32>
    %66 = arith.maximumf %64, %65 : vector<16x256xf32>
    %67 = vector.broadcast %4 : vector<16x1xf32> to vector<16x256xf32>
    %68 = arith.mulf %66, %67 : vector<16x256xf32>
    %cst_28 = arith.constant dense<0.000000e+00> : vector<256xf32>
    %69 = vector.multi_reduction <add>, %68, %cst_28 [0] : vector<16x256xf32> to vector<256xf32>
    %70 = vector.shape_cast %69 : vector<256xf32> to vector<1x256xf32>
    %71 = arith.addf %46, %56 : vector<1x256xf32>
    %72 = arith.addf %71, %70 : vector<1x256xf32>
    %73 = vector.broadcast %5 : vector<1x1xf32> to vector<1x256xf32>
    %74 = arith.addf %72, %73 : vector<1x256xf32>
    %cst_29 = arith.constant 0.000000e+00 : f32
    %75 = vector.broadcast %cst_29 : f32 to vector<1x256xf32>
    %76 = arith.subf %75, %74 : vector<1x256xf32>
    %77 = math.exp %76 : vector<1x256xf32>
    %cst_30 = arith.constant 1.000000e+00 : f32
    %78 = vector.broadcast %cst_30 : f32 to vector<1x256xf32>
    %79 = arith.addf %78, %77 : vector<1x256xf32>
    %80 = tpu.reciprocal %79 : vector<1x256xf32> -> vector<1x256xf32>
    %c0_31 = arith.constant 0 : index
    %c0_32 = arith.constant 0 : index
    %81 = vector.load %arg6[%c0_31, %c0_32] : memref<1x256xf32, #tpu.memory_space<vmem>>, vector<1x256xf32>
    tpu.vector_store %arg6[%c0_31, %c0_32], %80 {strides = array<i32>} : memref<1x256xf32, #tpu.memory_space<vmem>>, vector<1x256xf32>,
    return
  }
  func.func @transform_0(%arg0: i32) -> (i32, i32) {
    %c0_i32 = arith.constant 0 : i32
    %c0_i32_0 = arith.constant 0 : i32
    return %c0_i32, %arg0 : i32, i32
  }
  func.func @transform_1(%arg0: i32) -> (i32, i32) {
    %c0_i32 = arith.constant 0 : i32
    %c0_i32_0 = arith.constant 0 : i32
    %c0_i32_1 = arith.constant 0 : i32
    return %c0_i32, %c0_i32_0 : i32, i32
  }
  func.func @transform_2(%arg0: i32) -> (i32, i32, i32) {
    %c0_i32 = arith.constant 0 : i32
    %c0_i32_0 = arith.constant 0 : i32
    %c0_i32_1 = arith.constant 0 : i32
    %c0_i32_2 = arith.constant 0 : i32
    return %c0_i32, %c0_i32_0, %c0_i32_1 : i32, i32, i32
  }
  func.func @transform_3(%arg0: i32) -> (i32, i32) {
    %c0_i32 = arith.constant 0 : i32
    %c0_i32_0 = arith.constant 0 : i32
    %c0_i32_1 = arith.constant 0 : i32
    return %c0_i32, %c0_i32_0 : i32, i32
  }
  func.func @transform_4(%arg0: i32) -> (i32, i32) {
    %c0_i32 = arith.constant 0 : i32
    %c0_i32_0 = arith.constant 0 : i32
    %c0_i32_1 = arith.constant 0 : i32
    return %c0_i32, %c0_i32_0 : i32, i32
  }
  func.func @transform_5(%arg0: i32) -> (i32, i32) {
    %c0_i32 = arith.constant 0 : i32
    %c0_i32_0 = arith.constant 0 : i32
    return %c0_i32, %arg0 : i32, i32
  }
}

</mosaic_0001>

<bundles_post_ra>
// kernel: tpu_custom_call.1
= control target key start
LH: loop header
LB: loop body
LE: loop exit
PB: predicated region body
PF: predicated region fallthrough
CT: control target
= control target key end

     0   :  { %v28_v0 = vlaneseq  ;;  %v1612_v1 = vmov 0.0   ;;  %s2145_s0 = inlined_call_operand.vmem [shape: s32[3,256], index: 0, kind: input, shape index: {}]   ;;  %s2146_s1 = inlined_call_operand.vmem [shape: f32[24,128], index: 1, kind: input, shape index: {}]   ;;  %s2147_s2 = inlined_call_operand.vmem [shape: f32[3,32,16], index: 2, kind: input, shape index: {}]   ;;  %s2148_s3 = inlined_call_operand.vmem [shape: f32[16,32], index: 3, kind: input, shape index: {}]   ;;  %s2149_s4 = inlined_call_operand.vmem [shape: f32[32,4], index: 4, kind: input, shape index: {}]   ;;  %s2150_s5 = inlined_call_operand.hbm [shape: f32[1,256], index: 5, kind: output, shape index: {}]  }
   0x1   :  { %214 = vmatprep.mubr.f32.mxu0 %v1612_v1  ;;  %518 = vmatprep.mubr.f32.mxu1 %v1612_v1 }
   0x2   :  { %v1653_v2 = vshrl.u32 %v28_v0, 7 }
   0x3   :  { %10 = vsyncpa [#allocation3], 0  ;;  %v45_v3 = vld [vmem:[%s2145_s0] ss:$4 sm:$0x3]  ;;  %v1836_v28 = vld [vmem:[%s2146_s1 + $0x8] sm:$0xff] }
   0x4   :  { %v1659_v4 = vadd.s32 8, %v1653_v2  ;;  %v1662_v5 = vsub.s32 1, %v1653_v2  ;;  %v1665_v6 = vsub.s32 0, %v1653_v2  ;;  %v1668_v7 = vadd.s32 16, %v1653_v2  ;;  %v1819_v27 = vld [vmem:[%s2146_s1] sm:$0xff]  ;;  %v1853_v29 = vld [vmem:[%s2146_s1 + $0x10] sm:$0xff] }
   0x5   :  { %v1671_v8 = vadd.s32 24, %v1653_v2  ;;  %v1680_v11 = vadd.s32 32, %v1653_v2  ;;  %v1683_v12 = vadd.s32 40, %v1653_v2  ;;  %v1613_v13 = vmov 1.0|1.0   ;;  %v1340_v62 = vld [vmem:[%s2147_s2 + $0x28] sm:$0xff] }
   0x6   :  { %v1674_v9 = vrot.slane %v45_v3, %v1662_v5  ;;  %v1677_v10 = vrot.slane %v45_v3, %v1665_v6  ;;  %v1707_v14 = vadd.s32 48, %v1653_v2  ;;  %v1710_v15 = vadd.s32 56, %v1653_v2  ;;  %v1274_v24 = vld [vmem:[%s2145_s0 + $0x1] ss:$4 sm:$0x3]  ;;  %v1341_v63 = vld [vmem:[%s2147_s2 + $0x30] sm:$0xff] }
   0x7   :  { %v1723_v16 = vadd.s32 64, %v1653_v2  ;;  %v1726_v17 = vadd.s32 72, %v1653_v2  ;;  %v1739_v18 = vadd.s32 80, %v1653_v2  ;;  %v1742_v19 = vadd.s32 88, %v1653_v2 }
   0x8   :  { %vm55_vm0 = vcmp.eq.s32.totalorder %v1653_v2, %v1674_v9  ;;  %vm57_vm1 = vcmp.eq.s32.totalorder %v1659_v4, %v1674_v9  ;;  %vm54_vm2 = vcmp.eq.s32.totalorder %v1653_v2, %v1677_v10  ;;  %vm56_vm3 = vcmp.eq.s32.totalorder %v1659_v4, %v1677_v10  ;;  %v1351_v41 = vld [vmem:[%s2145_s0 + $0x2] ss:$4 sm:$0x3] }
   0x9   :  { %vm1426_vm4 = vmpackc.low %vm57_vm1, %vm55_vm0  ;;  %vm59_vm5 = vcmp.eq.s32.totalorder %v1668_v7, %v1674_v9  ;;  %vm61_vm6 = vcmp.eq.s32.totalorder %v1671_v8, %v1674_v9  ;;  %vm58_vm7 = vcmp.eq.s32.totalorder %v1668_v7, %v1677_v10  ;;  %vm60_vm8 = vcmp.eq.s32.totalorder %v1671_v8, %v1677_v10 }
   0xa   :  { %1427 = vmatprep.subr.msk.bf16.mxu0 %vm1426_vm4, %v1613_v13  ;;  %vm1428_vm9 = vmpackc.low %vm56_vm3, %vm54_vm2  ;;  %vm63_vm10 = vcmp.eq.s32.totalorder %v1680_v11, %v1674_v9  ;;  %vm65_vm11 = vcmp.eq.s32.totalorder %v1683_v12, %v1674_v9  ;;  %vm62_vm15 = vcmp.eq.s32.totalorder %v1680_v11, %v1677_v10  ;;  %vm64_vm0 = vcmp.eq.s32.totalorder %v1683_v12, %v1677_v10 }
   0xb   :  { %1429 = vmatpush1.bf16.msk.msra.mxu0 %vm1428_vm9, %v1613_v13  ;;  %vm1430_vm12 = vmpackc.low %vm61_vm6, %vm59_vm5  ;;  %vm67_vm1 = vcmp.eq.s32.totalorder %v1707_v14, %v1674_v9  ;;  %vm69_vm2 = vcmp.eq.s32.totalorder %v1710_v15, %v1674_v9  ;;  %vm66_vm5 = vcmp.eq.s32.totalorder %v1707_v14, %v1677_v10  ;;  %vm68_vm6 = vcmp.eq.s32.totalorder %v1710_v15, %v1677_v10 }
   0xc   :  { %1431 = vmatprep.subr.msk.bf16.mxu0 %vm1430_vm12, %v1613_v13  ;;  %vm1432_vm13 = vmpackc.low %vm60_vm8, %vm58_vm7  ;;  %vm71_vm7 = vcmp.eq.s32.totalorder %v1723_v16, %v1674_v9  ;;  %vm73_vm8 = vcmp.eq.s32.totalorder %v1726_v17, %v1674_v9  ;;  %vm72_vm12 = vcmp.eq.s32.totalorder %v1726_v17, %v1677_v10  ;;  %v1755_v20 = vadd.s32 96, %v1653_v2 }
   0xd   :  { %vm1434_vm14 = vmpackc.low %vm65_vm11, %vm63_vm10  ;;  %vm70_vm11 = vcmp.eq.s32.totalorder %v1723_v16, %v1677_v10  ;;  %v1758_v21 = vadd.s32 104, %v1653_v2  ;;  %v1771_v22 = vadd.s32 112, %v1653_v2  ;;  %v1774_v23 = vadd.s32 120, %v1653_v2 }
   0xe   :  { %vm1436_vm3 = vmpackc.low %vm64_vm0, %vm62_vm15  ;;  %v1790_v25 = vrot.slane %v1274_v24, %v1662_v5  ;;  %v1799_v26 = vrot.slane %v1274_v24, %v1665_v6  ;;  %v1923_v48 = vrot.slane %v1351_v41, %v1662_v5  ;;  %v1951_v3 = vrot.slane %v1351_v41, %v1665_v6  ;;  %v1342_v5 = vld [vmem:[%s2147_s2 + $0x38] sm:$0xff]  ;;  %v233_v6 = vld [vmem:[%s2147_s2] sm:$0xff] }
   0xf   :  { %1433 = vmatpush1.bf16.msk.msra.mxu0 %vm1432_vm13, %v1613_v13  ;;  %vm1438_vm4 = vmpackc.low %vm69_vm2, %vm67_vm1  ;;  %vm75_vm13 = vcmp.eq.s32.totalorder %v1739_v18, %v1674_v9  ;;  %vm74_vm1 = vcmp.eq.s32.totalorder %v1739_v18, %v1677_v10  ;;  %vm76_vm2 = vcmp.eq.s32.totalorder %v1742_v19, %v1677_v10 }
  0x10   :  { %1435 = vmatprep.subr.msk.bf16.mxu0 %vm1434_vm14, %v1613_v13  ;;  %vm1440_vm9 = vmpackc.low %vm68_vm6, %vm66_vm5  ;;  %vm77_vm14 = vcmp.eq.s32.totalorder %v1742_v19, %v1674_v9 }
  0x11   :  { %vm1442_vm10 = vmpackc.low %vm73_vm8, %vm71_vm7  ;;  %vm78_vm7 = vcmp.eq.s32.totalorder %v1755_v20, %v1677_v10  ;;  %vm80_vm8 = vcmp.eq.s32.totalorder %v1758_v21, %v1677_v10 }
  0x12   :  { %vm1444_vm15 = vmpackc.low %vm72_vm12, %vm70_vm11 }
  0x13   :  { %1437 = vmatpush1.bf16.msk.msra.mxu0 %vm1436_vm3, %v1613_v13  ;;  %vm1446_vm0 = vmpackc.low %vm77_vm14, %vm75_vm13  ;;  %vm79_vm3 = vcmp.eq.s32.totalorder %v1755_v20, %v1674_v9  ;;  %vm82_vm13 = vcmp.eq.s32.totalorder %v1771_v22, %v1677_v10  ;;  %vm84_vm14 = vcmp.eq.s32.totalorder %v1774_v23, %v1677_v10  ;;  %v2068_v10 = vld [vmem:[%s2149_s4] sm:$0xff] }
  0x14   :  { %1439 = vmatprep.subr.msk.bf16.mxu0 %vm1438_vm4, %v1613_v13  ;;  %vm81_vm4 = vcmp.eq.s32.totalorder %v1758_v21, %v1674_v9  ;;  %vm1448_vm5 = vmpackc.low %vm76_vm2, %vm74_vm1 }
  0x15   :  { %vm1450_vm6 = vmpackc.low %vm81_vm4, %vm79_vm3  ;;  %vm251_vm3 = vcmp.eq.s32.totalorder %v1653_v2, %v1799_v26  ;;  %vm253_vm4 = vcmp.eq.s32.totalorder %v1659_v4, %v1799_v26 }
  0x16   :  { %vm1452_vm11 = vmpackc.low %vm80_vm8, %vm78_vm7 }
  0x17   :  { %1441 = vmatpush1.bf16.msk.msra.mxu0 %vm1440_vm9, %v1613_v13  ;;  %vm83_vm9 = vcmp.eq.s32.totalorder %v1771_v22, %v1674_v9  ;;  %vm1456_vm1 = vmpackc.low %vm84_vm14, %vm82_vm13 }
  0x18   :  { %1443 = vmatprep.subr.msk.bf16.mxu0 %vm1442_vm10, %v1613_v13  ;;  %vm85_vm10 = vcmp.eq.s32.totalorder %v1774_v23, %v1674_v9  ;;  %vm1460_vm7 = vmpackc.low %vm253_vm4, %vm251_vm3  ;;  %v1339_v9 = vld [vmem:[%s2147_s2 + $0x20] sm:$0xff] }
  0x19   :  { %vm1454_vm12 = vmpackc.low %vm85_vm10, %vm83_vm9  ;;  %vm255_vm9 = vcmp.eq.s32.totalorder %v1668_v7, %v1799_v26  ;;  %vm257_vm10 = vcmp.eq.s32.totalorder %v1671_v8, %v1799_v26 }
  0x1a   :  { %vm1464_vm13 = vmpackc.low %vm257_vm10, %vm255_vm9 }
  0x1b   :  { %1445 = vmatpush1.bf16.msk.msra.mxu0 %vm1444_vm15, %v1613_v13  ;;  %vm252_vm15 = vcmp.eq.s32.totalorder %v1653_v2, %v1790_v25 }
  0x1c   :  { %1447 = vmatprep.subr.msk.bf16.mxu0 %vm1446_vm0, %v1613_v13  ;;  %vm254_vm0 = vcmp.eq.s32.totalorder %v1659_v4, %v1790_v25 }
  0x1d   :  { %vm1458_vm2 = vmpackc.low %vm254_vm0, %vm252_vm15  ;;  %vm259_vm15 = vcmp.eq.s32.totalorder %v1680_v11, %v1799_v26  ;;  %vm261_vm0 = vcmp.eq.s32.totalorder %v1683_v12, %v1799_v26 }
  0x1e   :  { %vm1468_vm3 = vmpackc.low %vm261_vm0, %vm259_vm15 }
  0x1f   :  { %1449 = vmatpush1.bf16.msk.msra.mxu0 %vm1448_vm5, %v1613_v13  ;;  %vm256_vm5 = vcmp.eq.s32.totalorder %v1668_v7, %v1790_v25 }
  0x20   :  { %1451 = vmatprep.subr.msk.bf16.mxu0 %vm1450_vm6, %v1613_v13  ;;  %vm258_vm6 = vcmp.eq.s32.totalorder %v1671_v8, %v1790_v25 }
  0x21   :  { %vm1462_vm8 = vmpackc.low %vm258_vm6, %vm256_vm5  ;;  %vm263_vm5 = vcmp.eq.s32.totalorder %v1707_v14, %v1799_v26  ;;  %vm265_vm6 = vcmp.eq.s32.totalorder %v1710_v15, %v1799_v26 }
  0x22   :  { %vm1472_vm9 = vmpackc.low %vm265_vm6, %vm263_vm5 }
  0x23   :  { %1453 = vmatpush1.bf16.msk.msra.mxu0 %vm1452_vm11, %v1613_v13  ;;  %vm260_vm11 = vcmp.eq.s32.totalorder %v1680_v11, %v1790_v25 }
  0x24   :  { %1455 = vmatprep.subr.msk.bf16.mxu0 %vm1454_vm12, %v1613_v13  ;;  %vm262_vm12 = vcmp.eq.s32.totalorder %v1683_v12, %v1790_v25 }
  0x25   :  { %vm1466_vm14 = vmpackc.low %vm262_vm12, %vm260_vm11  ;;  %vm267_vm11 = vcmp.eq.s32.totalorder %v1723_v16, %v1799_v26  ;;  %vm269_vm12 = vcmp.eq.s32.totalorder %v1726_v17, %v1799_v26 }
  0x26   :  { %vm1476_vm15 = vmpackc.low %vm269_vm12, %vm267_vm11 }
  0x27   :  { %1457 = vmatpush1.bf16.msk.msra.mxu0 %vm1456_vm1, %v1613_v13  ;;  %vm264_vm1 = vcmp.eq.s32.totalorder %v1707_v14, %v1790_v25 }
  0x28   :  { %1459 = vmatprep.subr.msk.bf16.mxu0 %vm1458_vm2, %v1613_v13  ;;  %vm266_vm2 = vcmp.eq.s32.totalorder %v1710_v15, %v1790_v25 }
  0x29   :  { %vm1470_vm4 = vmpackc.low %vm266_vm2, %vm264_vm1  ;;  %vm271_vm1 = vcmp.eq.s32.totalorder %v1739_v18, %v1799_v26  ;;  %vm273_vm2 = vcmp.eq.s32.totalorder %v1742_v19, %v1799_v26 }
  0x2a   :  { %215 = vmatmul.mubr.f32.vlgmr.msra.gmra.mrb[0].mxu0 %v1819_v27  ;;  %vm1480_vm5 = vmpackc.low %vm273_vm2, %vm271_vm1  ;;  %vm665_vm1 = vcmp.eq.s32.totalorder %v1659_v4, %v1923_v48  ;;  %vm435_vm2 = vcmask 130048  }
  0x2b   :  { %1461 = vmatpush1.bf16.msk.msra.mxu0 %vm1460_vm7, %v1613_v13  ;;  %220 = vmatprep.mubr.f32.mxu0 %v1612_v1  ;;  %vm268_vm7 = vcmp.eq.s32.totalorder %v1723_v16, %v1790_v25 }
  0x2c   :  { %1463 = vmatprep.subr.msk.bf16.mxu0 %vm1462_vm8, %v1613_v13  ;;  %vm270_vm8 = vcmp.eq.s32.totalorder %v1726_v17, %v1790_v25 }
  0x2d   :  { %vm1474_vm10 = vmpackc.low %vm270_vm8, %vm268_vm7  ;;  %vm275_vm7 = vcmp.eq.s32.totalorder %v1755_v20, %v1799_v26  ;;  %vm277_vm8 = vcmp.eq.s32.totalorder %v1758_v21, %v1799_v26 }
  0x2e   :  { %221 = vmatmul.mubr.f32.gmra.mrb[2].mxu0 %v1836_v28  ;;  %vm1484_vm11 = vmpackc.low %vm277_vm8, %vm275_vm7  ;;  %vm669_vm7 = vcmp.eq.s32.totalorder %v1671_v8, %v1923_v48 }
  0x2f   :  { %1465 = vmatpush1.bf16.msk.msra.mxu0 %vm1464_vm13, %v1613_v13  ;;  %226 = vmatprep.mubr.f32.mxu0 %v1612_v1  ;;  %vm272_vm13 = vcmp.eq.s32.totalorder %v1739_v18, %v1790_v25 }
  0x30   :  { %1467 = vmatprep.subr.msk.bf16.mxu0 %vm1466_vm14, %v1613_v13  ;;  %vm274_vm14 = vcmp.eq.s32.totalorder %v1742_v19, %v1790_v25 }
  0x31   :  { %vm1478_vm0 = vmpackc.low %vm274_vm14, %vm272_vm13  ;;  %vm279_vm13 = vcmp.eq.s32.totalorder %v1771_v22, %v1799_v26  ;;  %vm281_vm14 = vcmp.eq.s32.totalorder %v1774_v23, %v1799_v26 }
  0x32   :  { %227 = vmatmul.mubr.f32.gmra.mrb[4].mxu0 %v1853_v29 }
  0x33   :  { %1469 = vmatpush1.bf16.msk.msra.mxu0 %vm1468_vm3, %v1613_v13  ;;  %411 = vmatprep.mubr.f32.mxu0 %v1612_v1  ;;  %vm276_vm3 = vcmp.eq.s32.totalorder %v1755_v20, %v1790_v25 }
  0x34   :  { %1471 = vmatprep.subr.msk.bf16.mxu0 %vm1470_vm4, %v1613_v13  ;;  %vm278_vm4 = vcmp.eq.s32.totalorder %v1758_v21, %v1790_v25 }
  0x35   :  { %vm1482_vm6 = vmpackc.low %vm278_vm4, %vm276_vm3  ;;  %vm662_vm4 = vcmp.eq.s32.totalorder %v1653_v2, %v1951_v3 }
  0x37   :  { %1473 = vmatpush1.bf16.msk.msra.mxu0 %vm1472_vm9, %v1613_v13  ;;  %vm280_vm9 = vcmp.eq.s32.totalorder %v1771_v22, %v1790_v25 }
  0x38   :  { %1475 = vmatprep.subr.msk.bf16.mxu0 %vm1474_vm10, %v1613_v13  ;;  %vm282_vm10 = vcmp.eq.s32.totalorder %v1774_v23, %v1790_v25 }
  0x39   :  { %vm1486_vm12 = vmpackc.low %vm282_vm10, %vm280_vm9  ;;  %vm666_vm10 = vcmp.eq.s32.totalorder %v1668_v7, %v1951_v3 }
  0x3b   :  { %1477 = vmatpush1.bf16.msk.msra.mxu0 %vm1476_vm15, %v1613_v13  ;;  %vm1488_vm15 = vmpackc.low %vm281_vm14, %vm279_vm13  ;;  %vm673_vm13 = vcmp.eq.s32.totalorder %v1683_v12, %v1923_v48 }
  0x3c   :  { %1479 = vmatprep.subr.msk.bf16.mxu0 %vm1478_vm0, %v1613_v13  ;;  %vm663_vm0 = vcmp.eq.s32.totalorder %v1653_v2, %v1923_v48 }
  0x3d   :  { %vm1498_vm3 = vmpackc.low %vm665_vm1, %vm663_vm0  ;;  %vm670_vm0 = vcmp.eq.s32.totalorder %v1680_v11, %v1951_v3  ;;  %vm672_vm1 = vcmp.eq.s32.totalorder %v1683_v12, %v1951_v3  ;;  %v1614_v12 = vmov 0  }
  0x3e   :  { %1572 = vset.pattern.permute.xlu0 %v1614_v12  ;;  %1573 = vset.pattern.permute.xlu1 %v1614_v12 }
  0x3f   :  { %1481 = vmatpush1.bf16.msk.msra.mxu0 %vm1480_vm5, %v1613_v13  ;;  %vm664_vm5 = vcmp.eq.s32.totalorder %v1659_v4, %v1951_v3  ;;  %v234_v4 = vld [vmem:[%s2147_s2 + $0x8] sm:$0xff]  ;;  %995 = vperm.xlu0 %1572, %v2068_v10  }
  0x40   :  { %1483 = vmatprep.subr.msk.bf16.mxu0 %vm1482_vm6, %v1613_v13  ;;  %vm667_vm6 = vcmp.eq.s32.totalorder %v1668_v7, %v1923_v48  ;;  %vm1500_vm8 = vmpackc.low %vm664_vm5, %vm662_vm4  ;;  %vm677_vm4 = vcmp.eq.s32.totalorder %v1710_v15, %v1923_v48  ;;  %v235_v7 = vld [vmem:[%s2147_s2 + $0x10] sm:$0xff] }
  0x41   :  { %vm1502_vm9 = vmpackc.low %vm669_vm7, %vm667_vm6  ;;  %vm674_vm7 = vcmp.eq.s32.totalorder %v1707_v14, %v1951_v3 }
  0x42   :  { %vm1508_vm5 = vmpackc.low %vm672_vm1, %vm670_vm0  ;;  %vm685_vm0 = vcmp.eq.s32.totalorder %v1742_v19, %v1923_v48 }
  0x43   :  { %1485 = vmatpush1.bf16.msk.msra.mxu0 %vm1484_vm11, %v1613_v13  ;;  %vm668_vm11 = vcmp.eq.s32.totalorder %v1671_v8, %v1951_v3  ;;  %v236_v8 = vld [vmem:[%s2147_s2 + $0x18] sm:$0xff] }
  0x44   :  { %1487 = vmatprep.subr.msk.bf16.mxu0 %vm1486_vm12, %v1613_v13  ;;  %vm671_vm12 = vcmp.eq.s32.totalorder %v1680_v11, %v1923_v48  ;;  %vm1504_vm14 = vmpackc.low %vm668_vm11, %vm666_vm10  ;;  %vm681_vm10 = vcmp.eq.s32.totalorder %v1726_v17, %v1923_v48  ;;  %v26_v11 = vld [vmem:[%s2149_s4 + $0x10] sm:$0xff] }
  0x45   :  { %1005 = vperm.xlu1 %1573, %v26_v11   ;;  %v1617_v11 = vmov 3  }
  0x47   :  { %1489 = vmatpush1.bf16.msk.msra.mxu0 %vm1488_vm15, %v1613_v13  ;;  %vm1506_vm15 = vmpackc.low %vm673_vm13, %vm671_vm12  ;;  %vm678_vm13 = vcmp.eq.s32.totalorder %v1723_v16, %v1951_v3 }
  0x4a   :  { %412 = vmatmul.mubr.f32.vlgmr.msra.gmra.mrb[6].mxu0 %v1819_v27 }
  0x4b   :  { %417 = vmatprep.mubr.f32.mxu0 %v1612_v1 }
  0x4e   :  { %418 = vmatmul.mubr.f32.gmra.mrb[8].mxu0 %v1836_v28 }
  0x4f   :  { %423 = vmatprep.mubr.f32.mxu0 %v1612_v1 }
  0x52   :  { %424 = vmatmul.mubr.f32.gmra.mrb[4].mxu0 %v1853_v29 }
  0x53   :  { %512 = vmatprep.mubr.f32.mxu0 %v1612_v1 }
  0xbe   :  { %v996_v12 = vpop.permute.xlu0 %995 }
  0xfd   :  { %v216_v30 = vpop.f32.mrb[0].mxu0 }
  0xfe   :  { %v218_v31 = vpop.f32.mrb[1].mxu0  ;;  %v237_v37 = vmul.f32 %v216_v30, %v216_v30 }
  0xff   :  { %v238_v42 = vmul.f32 %v218_v31, %v218_v31 }
 0x101   :  { %v222_v32 = vpop.f32.mrb[2].mxu0 }
 0x102   :  { %v1496_v33 = vpack.c.bf16 %v222_v32, %v216_v30  ;;  %v224_v34 = vpop.f32.mrb[3].mxu0  ;;  %v239_v49 = vmul.f32 %v222_v32, %v222_v32 }
 0x103   :  { %v1494_v35 = vpack.c.bf16 %v224_v34, %v218_v31  ;;  %v240_v54 = vmul.f32 %v224_v34, %v224_v34 }
 0x11d   :  { %v413_v36 = vpop.f32.mrb[6].mxu0 }
 0x11e   :  { %v1911_v38 = vadd.f32 %v413_v36, %v216_v30  ;;  %v543_v39 = vmul.f32 %v413_v36, %v413_v36  ;;  %v415_v40 = vpop.f32.mrb[7].mxu0 }
 0x11f   :  { %v1916_v43 = vadd.f32 %v415_v40, %v218_v31  ;;  %v544_v44 = vmul.f32 %v415_v40, %v415_v40 }
 0x120   :  { %v1918_v45 = vadd.f32 %v543_v39, %v237_v37 }
 0x121   :  { %v1920_v46 = vadd.f32 %v544_v44, %v238_v42  ;;  %v419_v47 = vpop.f32.mrb[8].mxu0 }
 0x122   :  { %v1492_v50 = vpack.c.bf16 %v419_v47, %v413_v36  ;;  %v1925_v51 = vadd.f32 %v419_v47, %v222_v32  ;;  %v545_v52 = vmul.f32 %v419_v47, %v419_v47  ;;  %v421_v53 = vpop.f32.mrb[9].mxu0 }
 0x123   :  { %v1490_v55 = vpack.c.bf16 %v421_v53, %v415_v40  ;;  %v1927_v56 = vadd.f32 %v421_v53, %v224_v34  ;;  %v546_v57 = vmul.f32 %v421_v53, %v421_v53 }
 0x124   :  { %v1929_v58 = vadd.f32 %v545_v52, %v239_v49  ;;  %v1417_v49 = vld [vmem:[%s2147_s2 + $0x48] sm:$0xff] }
 0x125   :  { %v1931_v59 = vadd.f32 %v546_v57, %v240_v54  ;;  %v1933_v60 = vpop.f32.mrb[4].mxu0  ;;  %1491 = vmatprep.subr.bf16.mxu0 %v1490_v55  ;;  %1542 = vmatprep.subr.bf16.mxu1 %v1490_v55  ;;  %v1418_v54 = vld [vmem:[%s2147_s2 + $0x50] sm:$0xff] }
 0x126   :  { %v1939_v61 = vpop.f32.mrb[5].mxu0  ;;  %1493 = vmatpush1.bf16.msra.mxu0 %v1492_v50  ;;  %1543 = vmatpush1.bf16.msra.mxu1 %v1492_v50 }
 0x127   :  { %1495 = vmatprep.subr.bf16.mxu1 %v1494_v35 }
 0x129   :  { %1344 = vmatmul.mubr.msk.f32.vlgmr.msra.gmra.mrb[0].mxu1 %vm435_vm2, %v1340_v62  ;;  %1343 = vmatmul.mubr.msk.f32.vlgmr.msra.gmra.mrb[10].mxu0 %vm435_vm2, %v1339_v9  ;;  %v1616_v9 = vmov 2  }
 0x12a   :  { %1497 = vmatpush1.bf16.msra.mxu1 %v1496_v33  ;;  %524 = vmatprep.mubr.f32.mxu1 %v1612_v1 }
 0x12b   :  { %1499 = vmatprep.subr.msk.bf16.mxu1 %vm1498_vm3, %v1613_v13  ;;  %vm675_vm3 = vcmp.eq.s32.totalorder %v1707_v14, %v1923_v48  ;;  %v27_v14 = vld [vmem:[%s2149_s4 + $0x18] sm:$0xff] }
 0x12c   :  { %vm1510_vm6 = vmpackc.low %vm677_vm4, %vm675_vm3  ;;  %vm682_vm4 = vcmp.eq.s32.totalorder %v1739_v18, %v1951_v3  ;;  %1010 = vperm.xlu1 %1573, %v27_v14  }
 0x12d   :  { %1345 = vmatmul.mubr.msk.f32.gmra.mrb[2].mxu1 %vm435_vm2, %v1341_v63 }
 0x12e   :  { %530 = vmatprep.mubr.f32.mxu1 %v1612_v1 }
 0x131   :  { %1346 = vmatmul.mubr.msk.f32.gmra.mrb[4].mxu1 %vm435_vm2, %v1342_v5 }
 0x132   :  { %627 = vmatprep.mubr.f32.mxu1 %v1612_v1 }
 0x135   :  { %1347 = vmatmul.mubr.msk.f32.vlgmr.msra.gmra.mrb[6].mxu1 %vm435_vm2, %v233_v6 }
 0x136   :  { %1501 = vmatpush1.bf16.msk.msra.mxu1 %vm1500_vm8, %v1613_v13  ;;  %633 = vmatprep.mubr.f32.mxu1 %v1612_v1  ;;  %vm676_vm8 = vcmp.eq.s32.totalorder %v1710_v15, %v1951_v3 }
 0x137   :  { %1503 = vmatprep.subr.msk.bf16.mxu1 %vm1502_vm9, %v1613_v13  ;;  %vm679_vm9 = vcmp.eq.s32.totalorder %v1723_v16, %v1923_v48  ;;  %vm1512_vm11 = vmpackc.low %vm676_vm8, %vm674_vm7  ;;  %vm689_vm7 = vcmp.eq.s32.totalorder %v1758_v21, %v1923_v48 }
 0x138   :  { %vm1514_vm12 = vmpackc.low %vm681_vm10, %vm679_vm9  ;;  %vm686_vm10 = vcmp.eq.s32.totalorder %v1755_v20, %v1951_v3 }
 0x139   :  { %1348 = vmatmul.mubr.msk.f32.gmra.mrb[0].mxu1 %vm435_vm2, %v234_v4 }
 0x13a   :  { %1505 = vmatpush1.bf16.msk.msra.mxu1 %vm1504_vm14, %v1613_v13  ;;  %639 = vmatprep.mubr.f32.mxu1 %v1612_v1  ;;  %vm680_vm14 = vcmp.eq.s32.totalorder %v1726_v17, %v1951_v3 }
 0x13b   :  { %1507 = vmatprep.subr.msk.bf16.mxu1 %vm1506_vm15, %v1613_v13  ;;  %vm683_vm15 = vcmp.eq.s32.totalorder %v1739_v18, %v1923_v48  ;;  %vm1516_vm1 = vmpackc.low %vm680_vm14, %vm678_vm13  ;;  %vm693_vm13 = vcmp.eq.s32.totalorder %v1774_v23, %v1923_v48 }
 0x13c   :  { %vm1518_vm3 = vmpackc.low %vm685_vm0, %vm683_vm15  ;;  %vm690_vm0 = vcmp.eq.s32.totalorder %v1771_v22, %v1951_v3 }
 0x13d   :  { %1349 = vmatmul.mubr.msk.f32.gmra.mrb[2].mxu1 %vm435_vm2, %v235_v7 }
 0x13e   :  { %1509 = vmatpush1.bf16.msk.msra.mxu1 %vm1508_vm5, %v1613_v13  ;;  %645 = vmatprep.mubr.f32.mxu1 %v1612_v1  ;;  %vm684_vm5 = vcmp.eq.s32.totalorder %v1742_v19, %v1951_v3 }
 0x13f   :  { %1511 = vmatprep.subr.msk.bf16.mxu1 %vm1510_vm6, %v1613_v13  ;;  %vm687_vm6 = vcmp.eq.s32.totalorder %v1755_v20, %v1923_v48  ;;  %vm1520_vm8 = vmpackc.low %vm684_vm5, %vm682_vm4  ;;  %vm1193_vm4 = vcmp.lt.s32.totalorder %v28_v0, 256 }
 0x140   :  { %vm1522_vm9 = vmpackc.low %vm689_vm7, %vm687_vm6 }
 0x141   :  { %1350 = vmatmul.mubr.msk.f32.gmra.mrb[4].mxu1 %vm435_vm2, %v236_v8  ;;  %v1615_v8 = vmov 1  }
 0x142   :  { %1513 = vmatpush1.bf16.msk.msra.mxu1 %vm1512_vm11, %v1613_v13  ;;  %822 = vmatprep.mubr.f32.mxu1 %v1612_v1  ;;  %vm688_vm11 = vcmp.eq.s32.totalorder %v1758_v21, %v1951_v3 }
 0x143   :  { %1515 = vmatprep.subr.msk.bf16.mxu1 %vm1514_vm12, %v1613_v13  ;;  %vm691_vm12 = vcmp.eq.s32.totalorder %v1771_v22, %v1923_v48  ;;  %vm1524_vm14 = vmpackc.low %vm688_vm11, %vm686_vm10  ;;  %1575 = vset.pattern.permute.xlu1 %v1615_v8 }
 0x144   :  { %vm1526_vm15 = vmpackc.low %vm693_vm13, %vm691_vm12 }
 0x146   :  { %1517 = vmatpush1.bf16.msk.msra.mxu1 %vm1516_vm1, %v1613_v13  ;;  %vm692_vm1 = vcmp.eq.s32.totalorder %v1774_v23, %v1951_v3 }
 0x147   :  { %1519 = vmatprep.subr.msk.bf16.mxu1 %vm1518_vm3, %v1613_v13  ;;  %vm1528_vm3 = vmpackc.low %vm692_vm1, %vm690_vm0 }
 0x14a   :  { %1521 = vmatpush1.bf16.msk.msra.mxu1 %vm1520_vm8, %v1613_v13 }
 0x14b   :  { %1523 = vmatprep.subr.msk.bf16.mxu1 %vm1522_vm9, %v1613_v13 }
 0x14e   :  { %1525 = vmatpush1.bf16.msk.msra.mxu1 %vm1524_vm14, %v1613_v13 }
 0x14f   :  { %1527 = vmatprep.subr.msk.bf16.mxu1 %vm1526_vm15, %v1613_v13 }
 0x152   :  { %1529 = vmatpush1.bf16.msk.msra.mxu1 %vm1528_vm3, %v1613_v13  ;;  %v2077_v13 = vld [vmem:[%s2149_s4 + $0x8] sm:$0xff] }
 0x153   :  { %1000 = vperm.xlu0 %1572, %v2077_v13   ;;  %1036 = vperm.xlu1 %1575, %v2077_v13  }
 0x155   :  { %823 = vmatmul.mubr.f32.vlgmr.msra.gmra.mrb[8].mxu1 %v1819_v27 }
 0x156   :  { %828 = vmatprep.mubr.f32.mxu1 %v1612_v1 }
 0x157   :  { %1574 = vset.pattern.permute.xlu0 %v1615_v8  ;;  %1576 = vset.pattern.permute.xlu1 %v1616_v9 }
 0x158   :  { %1032 = vperm.xlu0 %1574, %v2068_v10   ;;  %1128 = vperm.xlu1 %1576, %v2068_v10  }
 0x159   :  { %829 = vmatmul.mubr.f32.gmra.mrb[10].mxu1 %v1836_v28 }
 0x15a   :  { %834 = vmatprep.mubr.f32.mxu1 %v1612_v1 }
 0x15c   :  { %1577 = vset.pattern.permute.xlu0 %v1616_v9  ;;  %1578 = vset.pattern.permute.xlu1 %v1617_v11 }
 0x15d   :  { %835 = vmatmul.mubr.f32.gmra.mrb[12].mxu1 %v1853_v29  ;;  %1132 = vperm.xlu0 %1577, %v2077_v13  }
 0x15e   :  { %922 = vmatprep.mubr.f32.mxu1 %v1612_v1  ;;  %1158 = vperm.xlu1 %1578, %v2068_v10  }
 0x161   :  { %1579 = vset.pattern.permute.xlu0 %v1617_v11 }
 0x1fc   :  { %v514_v4 = vpop.f32.mrb[10].mxu0 }
 0x1fd   :  { %v516_v7 = vpop.f32.mrb[11].mxu0 }
 0x228   :  { %v824_v15 = vpop.f32.mrb[8].mxu1 }
 0x229   :  { %v949_v16 = vadd.f32 %v824_v15, %v1911_v38  ;;  %v953_v17 = vmul.f32 %v824_v15, %v824_v15  ;;  %v826_v18 = vpop.f32.mrb[9].mxu1 }
 0x22a   :  { %v950_v19 = vadd.f32 %v826_v18, %v1916_v43  ;;  %v954_v20 = vmul.f32 %v826_v18, %v826_v18  ;;  %v1416_v43 = vld [vmem:[%s2147_s2 + $0x40] sm:$0xff] }
 0x22b   :  { %v957_v21 = vadd.f32 %v953_v17, %v1918_v45  ;;  %v969_v22 = vmul.f32 %v949_v16, %v949_v16 }
 0x22c   :  { %v958_v23 = vadd.f32 %v954_v20, %v1920_v46  ;;  %v970_v24 = vmul.f32 %v950_v19, %v950_v19  ;;  %v830_v25 = vpop.f32.mrb[10].mxu1 }
 0x22d   :  { %v973_v26 = vsub.f32 %v969_v22, %v957_v21  ;;  %v1532_v27 = vpack.c.bf16 %v830_v25, %v824_v15  ;;  %v951_v28 = vadd.f32 %v830_v25, %v1925_v51  ;;  %v955_v29 = vmul.f32 %v830_v25, %v830_v25  ;;  %v832_v30 = vpop.f32.mrb[11].mxu1  ;;  %v1006_v25 = vpop.permute.xlu1 %1005 }
 0x22e   :  { %v974_v31 = vsub.f32 %v970_v24, %v958_v23  ;;  %v1530_v32 = vpack.c.bf16 %v832_v30, %v826_v18  ;;  %v952_v33 = vadd.f32 %v832_v30, %v1927_v56  ;;  %v956_v34 = vmul.f32 %v832_v30, %v832_v30  ;;  %v1001_v18 = vpop.permute.xlu0 %1000 }
 0x22f   :  { %v959_v35 = vadd.f32 %v955_v29, %v1929_v58  ;;  %v971_v36 = vmul.f32 %v951_v28, %v951_v28 }
 0x230   :  { %v960_v37 = vadd.f32 %v956_v34, %v1931_v59  ;;  %v972_v38 = vmul.f32 %v952_v33, %v952_v33  ;;  %v836_v39 = vpop.f32.mrb[12].mxu1  ;;  %1531 = vmatprep.subr.bf16.mxu1 %v1530_v32  ;;  %v1419_v59 = vld [vmem:[%s2147_s2 + $0x58] sm:$0xff] }
 0x231   :  { %v975_v40 = vsub.f32 %v971_v36, %v959_v35  ;;  %v1544_v41 = vadd.f32 %v836_v39, %v1933_v60  ;;  %v838_v42 = vpop.f32.mrb[13].mxu1  ;;  %1533 = vmatpush1.bf16.msra.mxu1 %v1532_v27  ;;  %v1011_v34 = vpop.permute.xlu1 %1010 }
 0x232   :  { %v976_v44 = vsub.f32 %v972_v38, %v960_v37  ;;  %v1545_v45 = vadd.f32 %v838_v42, %v1939_v61 }
 0x233   :  { %v977_v46 = vadd.f32 %v975_v40, %v973_v26 }
 0x234   :  { %v984_v47 = vadd.f32 %v976_v44, %v974_v31  ;;  %1420 = vmatmul.mubr.msk.f32.vlgmr.msra.gmra.mrb[6].mxu1 %vm435_vm2, %v1416_v43 }
 0x235   :  { %v978_v48 = vrot.slane %v977_v46, 4  ;;  %928 = vmatprep.mubr.f32.mxu1 %v1612_v1 }
 0x236   :  { %v985_v50 = vrot.slane %v984_v47, 4 }
 0x237   :  { %v979_v51 = vadd.f32 %v978_v48, %v977_v46  ;;  %v1030_v46 = vld [vmem:[%s2148_s3 + $0x8] sm:$0xff] }
 0x238   :  { %v986_v52 = vadd.f32 %v985_v50, %v984_v47  ;;  %1421 = vmatmul.mubr.msk.f32.gmra.mrb[0].mxu1 %vm435_vm2, %v1417_v49  ;;  %v1033_v47 = vpop.permute.xlu0 %1032  ;;  %v1037_v49 = vpop.permute.xlu1 %1036 }
 0x239   :  { %v980_v53 = vrot.slane %v979_v51, 2  ;;  %934 = vmatprep.mubr.f32.mxu1 %v1612_v1 }
 0x23a   :  { %v987_v55 = vrot.slane %v986_v52, 2 }
 0x23b   :  { %v981_v56 = vadd.f32 %v980_v53, %v979_v51 }
 0x23c   :  { %v988_v57 = vadd.f32 %v987_v55, %v986_v52  ;;  %1422 = vmatmul.mubr.msk.f32.gmra.mrb[2].mxu1 %vm435_vm2, %v1418_v54 }
 0x23d   :  { %v982_v58 = vrot.slane %v981_v56, 1  ;;  %940 = vmatprep.mubr.f32.mxu1 %v1612_v1 }
 0x23e   :  { %v989_v60 = vrot.slane %v988_v57, 1 }
 0x23f   :  { %v983_v61 = vadd.f32 %v982_v58, %v981_v56 }
 0x240   :  { %v990_v62 = vadd.f32 %v989_v60, %v988_v57  ;;  %1423 = vmatmul.mubr.msk.f32.gmra.mrb[4].mxu1 %vm435_vm2, %v1419_v59  ;;  %vm1039_vm2 = vcmask 261120   ;;  %v1129_v59 = vpop.permute.xlu1 %1128  ;;  %v1133_v60 = vpop.permute.xlu0 %1132 }
 0x241   :  { %v991_v63 = vmul.f32 0.5, %v983_v61  ;;  %1110 = vmatprep.mubr.f32.mxu1 %v1612_v1 }
 0x242   :  { %v992_v3 = vmul.f32 0.5, %v990_v62 }
 0x243   :  { %v2113_v5 = vadd.f32 %v1544_v41, %v991_v63 }
 0x244   :  { %v2115_v6 = vadd.f32 %v1545_v45, %v992_v3  ;;  %v1029_v45 = vld [vmem:[%s2148_s3] sm:$0xff]  ;;  %s1619_s3 = smov [#allocation2]  }
 0x245   :  { %s1202_s10 = sshll.u32 %s1619_s3, 4  ;;  %s1203_s10 = int_to_ptr.vmem [resolvable:$true] %s1202_s10 }
 0x246   :  { %s1588_s11 = scalar_lea.vmem %s1203_s10, 32  ;;  %p1593_p1 = scmp.lt.s32.totalorder %s1203_s10, %s1203_s10 }
 0x247   :  { %p1589_p0 = scmp.ne.s32.totalorder %s1203_s10, %s1588_s11  ;;  %p1594_p2 = scmp.lt.s32.totalorder %s1588_s11, %s1588_s11 }
 0x249   :  { %p1595_p3 = por %p1594_p2, %p1593_p1 }
 0x24b   :  { %p1596_p4 = pnand %p1595_p3, %p1589_p0 }
 0x307   :  { %v924_v14 = vpop.f32.mrb[6].mxu1 }
 0x308   :  { %v1546_v15 = vadd.f32 %v924_v14, %v514_v4  ;;  %v926_v16 = vpop.f32.mrb[7].mxu1 }
 0x309   :  { %v1547_v17 = vadd.f32 %v926_v16, %v516_v7 }
 0x30a   :  { %v1013_v19 = vadd.f32 %v1546_v15, %v996_v12 }
 0x30b   :  { %v1014_v20 = vadd.f32 %v1547_v17, %v996_v12  ;;  %v930_v21 = vpop.f32.mrb[0].mxu1 }
 0x30c   :  { %v1015_v22 = vadd.f32 %v1001_v18, %v930_v21  ;;  %v932_v23 = vpop.f32.mrb[1].mxu1  ;;  %v1021_v26 = vmax.f32 %v1013_v19, 0.0 }
 0x30d   :  { %v1016_v24 = vadd.f32 %v1001_v18, %v932_v23  ;;  %v1022_v27 = vmax.f32 %v1014_v20, 0.0 }
 0x30e   :  { %v1023_v13 = vmax.f32 %v1015_v22, 0.0  ;;  %v1159_v22 = vpop.permute.xlu1 %1158 }
 0x30f   :  { %v1024_v28 = vmax.f32 %v1016_v24, 0.0  ;;  %v936_v29 = vpop.f32.mrb[2].mxu1 }
 0x310   :  { %v1536_v30 = vpack.c.bf16 %v1023_v13, %v1021_v26  ;;  %v938_v10 = vpop.f32.mrb[3].mxu1  ;;  %v1017_v32 = vadd.f32 %v1006_v25, %v936_v29 }
 0x311   :  { %v1534_v31 = vpack.c.bf16 %v1024_v28, %v1022_v27  ;;  %v1018_v33 = vadd.f32 %v1006_v25, %v938_v10 }
 0x312   :  { %v1025_v39 = vmax.f32 %v1017_v32, 0.0 }
 0x313   :  { %v942_v35 = vpop.f32.mrb[4].mxu1  ;;  %1535 = vmatprep.subr.bf16.mxu1 %v1534_v31  ;;  %v1026_v41 = vmax.f32 %v1018_v33, 0.0 }
 0x314   :  { %v1019_v36 = vadd.f32 %v1011_v34, %v942_v35  ;;  %v944_v37 = vpop.f32.mrb[5].mxu1  ;;  %1537 = vmatpush1.bf16.msra.mxu1 %v1536_v30 }
 0x315   :  { %v1020_v38 = vadd.f32 %v1011_v34, %v944_v37  ;;  %v1618_v34 = vmov 1966171168  }
 0x316   :  { %v1027_v40 = vmax.f32 %v1019_v36, 0.0  ;;  %v1177_v35 = vunpack.c.l.s4 %v1618_v34 }
 0x317   :  { %v1028_v42 = vmax.f32 %v1020_v38, 0.0 }
 0x318   :  { %v1540_v43 = vpack.c.bf16 %v1027_v40, %v1025_v39  ;;  %v1178_v36 = vunpack.c.0.s8 %v1177_v35 }
 0x319   :  { %v1538_v44 = vpack.c.bf16 %v1028_v42, %v1026_v41 }
 0x31b   :  { %1539 = vmatprep.subr.bf16.mxu1 %v1538_v44 }
 0x31c   :  { %1541 = vmatpush1.bf16.msra.mxu1 %v1540_v43 }
 0x31f   :  { %1424 = vmatmul.mubr.msk.f32.vlgmr.msra.gmra.mrb[14].mxu1 %vm1039_vm2, %v1029_v45 }
 0x320   :  { %1116 = vmatprep.mubr.f32.mxu1 %v1612_v1 }
 0x323   :  { %1425 = vmatmul.mubr.msk.f32.gmra.mrb[16].mxu1 %vm1039_vm2, %v1030_v46 }
 0x3f2   :  { %v1112_v48 = vpop.f32.mrb[14].mxu1 }
 0x3f3   :  { %v1114_v50 = vpop.f32.mrb[15].mxu1  ;;  %v1113_v51 = vadd.f32 %v1112_v48, %v1033_v47 }
 0x3f4   :  { %v1115_v52 = vadd.f32 %v1114_v50, %v1033_v47 }
 0x3f5   :  { %v1123_v54 = vmax.f32 %v1113_v51, 0.0 }
 0x3f6   :  { %v1118_v53 = vpop.f32.mrb[16].mxu1  ;;  %v1124_v57 = vmax.f32 %v1115_v52, 0.0 }
 0x3f7   :  { %v1119_v55 = vadd.f32 %v1118_v53, %v1037_v49  ;;  %v1120_v56 = vpop.f32.mrb[17].mxu1  ;;  %v1135_v62 = vmul.f32 %v1129_v59, %v1123_v54 }
 0x3f8   :  { %v1121_v58 = vadd.f32 %v1120_v56, %v1037_v49  ;;  %v1136_v3 = vmul.f32 %v1129_v59, %v1124_v57 }
 0x3f9   :  { %v1125_v1 = vmax.f32 %v1119_v55, 0.0 }
 0x3fa   :  { %v1126_v61 = vmax.f32 %v1121_v58, 0.0 }
 0x3fb   :  { %v1137_v63 = vmul.f32 %v1133_v60, %v1125_v1 }
 0x3fc   :  { %v1138_v4 = vmul.f32 %v1133_v60, %v1126_v61 }
 0x3fd   :  { %v1139_v7 = vadd.f32 %v1137_v63, %v1135_v62 }
 0x3fe   :  { %v1146_v8 = vadd.f32 %v1138_v4, %v1136_v3 }
 0x3ff   :  { %v1140_v9 = vrot.slane %v1139_v7, 4 }
 0x400   :  { %v1147_v11 = vrot.slane %v1146_v8, 4 }
 0x401   :  { %v1141_v12 = vadd.f32 %v1140_v9, %v1139_v7 }
 0x402   :  { %v1148_v14 = vadd.f32 %v1147_v11, %v1146_v8 }
 0x403   :  { %v1142_v15 = vrot.slane %v1141_v12, 2 }
 0x404   :  { %v1149_v16 = vrot.slane %v1148_v14, 2 }
 0x405   :  { %v1143_v17 = vadd.f32 %v1142_v15, %v1141_v12 }
 0x406   :  { %v1150_v18 = vadd.f32 %v1149_v16, %v1148_v14 }
 0x407   :  { %v1144_v19 = vrot.slane %v1143_v17, 1 }
 0x408   :  { %v1151_v20 = vrot.slane %v1150_v18, 1 }
 0x409   :  { %v1145_v21 = vadd.f32 %v1144_v19, %v1143_v17 }
 0x40a   :  { %v1152_v23 = vadd.f32 %v1151_v20, %v1150_v18 }
 0x40b   :  { %v1155_v24 = vadd.f32 %v2113_v5, %v1145_v21 }
 0x40c   :  { %v1156_v25 = vadd.f32 %v2115_v6, %v1152_v23  ;;  %v1181_v6 = vsub.s32 %v1178_v36, %v1653_v2 }
 0x40d   :  { %v1161_v26 = vadd.f32 %v1159_v22, %v1155_v24 }
 0x40e   :  { %v1162_v13 = vadd.f32 %v1159_v22, %v1156_v25 }
 0x40f   :  { %v1163_v27 = vsub.f32 0.0, %v1161_v26 }
 0x410   :  { %v1164_v28 = vsub.f32 0.0, %v1162_v13 }
 0x411   :  { %v1165_v29 = vmul.f32 1.442695, %v1163_v27 }
 0x412   :  { %v1167_v30 = vmul.f32 1.442695, %v1164_v28 }
 0x413   :  { %1580 = vpow2.f32 %v1165_v29 }
 0x414   :  { %1582 = vpow2.f32 %v1167_v30 }
 0x41d   :  { %v1581_v10 = vpop.eup %1580 }
 0x41e   :  { %v1583_v31 = vpop.eup %1582  ;;  %v1169_v32 = vadd.f32 1.0, %v1581_v10 }
 0x41f   :  { %v1170_v33 = vadd.f32 1.0, %v1583_v31 }
 0x420   :  { %1584 = vrcp.f32 %v1169_v32 }
 0x421   :  { %1586 = vrcp.f32 %v1170_v33 }
 0x42a   :  { %v1585_v5 = vpop.eup %1584 }
 0x42b   :  { %v1587_v37 = vpop.eup %1586 }
 0x42c   :  { %v1175_v38 = vcombine.low %v1585_v5, %v1587_v37 }
 0x42e   :  { %v1182_v39 = vrot.slane %v1175_v38, %v1181_v6 }
 0x430   :  { %v1189_v40 = vrot.slane %v1182_v39, %v1181_v6 }
 0x432   :  { %1195 = vst.msk [vmem:[#allocation2] sm:$0x3] %vm1193_vm4, %v1189_v40 }
 0x433   :  { %1599 = shalt.err (!%p1596_p4)
}
 0x434   :  { %s1600_s14 = scalar_lea.hbm %s2150_s5, 32 }
 0x435   :  { %p1601_p5 = scmp.ne.s32.totalorder %s2150_s5, %s1600_s14  ;;  %p1604_p6 = scmp.lt.u32.totalorder %s1600_s14, %s2150_s5 }
 0x437   :  { %p1606_p7 = pnand %p1604_p6, %p1601_p5 }
 0x439   :  { %1609 = shalt.err (!%p1606_p7)
}
 0x43a   :  { %1205 = dma.vmem_to_hbm [thread:$0]  %s1203_s10, 32, %s2150_s5, [#allocation3]  }
 0x43b   :  { %1610 = dma.done.wait [#allocation3], 32  }
 0x43c   :  { %1611 = vsyncadd [#allocation3], 4294967264 }
 0x43d   :  { %1209 = vsyncpa [#allocation3], 1 }

</bundles_post_ra>
